<compile_context>
chip_gen: v7x
topology: tpu7x:2x2x1
jax: 0.10.0
libtpu: 0.0.40
codegen_flags: <defaults>
</compile_context>

<pallas_src>
import functools

import jax
import jax.numpy as jnp
from jax.experimental import pallas as pl
from jax.experimental.pallas import tpu as pltpu

# Double-buffered-input VMEM budget for the streamed tile (safe on v5e/v6e/v7x).
_INPUT_VMEM_BUDGET = 8 * 1024 * 1024
_VMEM_LIMIT_BYTES = 32 * 1024 * 1024
_FALLBACK_LANES = 512  # lane width for the flatten+pad path (ragged shapes)


def _round_up(x, m):
    return ((x + m - 1) // m) * m


def _partial_sum_kernel(x_ref, o_ref, *, n_rows, need_mask):
    """Accumulate the sum of the (tm, p) tile into the resident (8, p) block.

    Grid = (num_cores [parallel], blocks_per_core [arbitrary]).
    Each core folds its row range into its own (8, p) output block with cheap
    VPU adds (no per-step cross-lane reduce); rows past the true N are masked
    out only when the tiling does not divide the input exactly.
    """
    c = pl.program_id(0)
    j = pl.program_id(1)
    tm, p = x_ref.shape

    @pl.when(j == 0)
    def _init():
        o_ref[...] = jnp.zeros_like(o_ref)

    x = x_ref[...].astype(jnp.float32)  # in-kernel accumulation cast

    if need_mask:
        # Global row index of the first row of this (unclamped) tile.
        row_start = (c * pl.num_programs(1) + j) * tm
        row_ids = row_start + jax.lax.broadcasted_iota(jnp.int32, (tm, 1), 0)
        x = jnp.where(row_ids < n_rows, x, 0.0)  # zero padded / OOB rows

    # Fold (tm, p) -> (8, p): split rows into sublane groups and add them.
    # Pure VPU work, fully hidden under the streaming DMA.
    o_ref[...] += x.reshape(tm // 8, 8, p).sum(axis=0)


def _pallas_sum_2d(x2, *, block_rows=None):
    """f32 sum of a lane-aligned 2D array, streamed through VMEM."""
    n, p = x2.shape
    assert p % 128 == 0, "last dim must be a multiple of 128 lanes"

    itemsize = jnp.dtype(x2.dtype).itemsize
    sub = max(8, 32 // itemsize)  # sublane packing: f32->8, bf16->16, int8->32

    if block_rows is None:
        # Largest tile whose double-buffered input stays inside the budget.
        max_tm = max(sub, ((_INPUT_VMEM_BUDGET // (2 * p * itemsize)) // sub) * sub)
        tm = min(max_tm, _round_up(n, sub))
    else:
        tm = _round_up(block_rows, sub)
    tm = max(tm, sub)

    nb = pl.cdiv(n, tm)                 # total row blocks
    num_cores = 2 if nb >= 2 else 1     # split rows across the 2 TCs on v7x
    bpc = pl.cdiv(nb, num_cores)        # row blocks per core
    # Masking is only needed when the tiling does not divide the input exactly
    # (edge tile or a clamped trailing block on the second core).
    need_mask = (n % tm != 0) or (nb != num_cores * bpc)

    def in_index_map(c, j):
        # Clamp so the trailing core never requests a fully out-of-range block;
        # its contribution is masked to zero inside the kernel anyway.
        return (jnp.minimum(c * bpc + j, nb - 1), 0)

    partials = pl.pallas_call(
        functools.partial(_partial_sum_kernel, n_rows=n, need_mask=need_mask),
        out_shape=jax.ShapeDtypeStruct((num_cores * 8, p), jnp.float32),
        grid_spec=pltpu.PrefetchScalarGridSpec(
            num_scalar_prefetch=0,
            grid=(num_cores, bpc),
            in_specs=[pl.BlockSpec((tm, p), in_index_map)],
            out_specs=pl.BlockSpec((8, p), lambda c, j: (c, 0)),
        ),
        compiler_params=pltpu.CompilerParams(
            dimension_semantics=("parallel", "arbitrary"),
            vmem_limit_bytes=_VMEM_LIMIT_BYTES,
        ),
    )(x2)

    # Final combine: one tiny reduce in plain JAX over (num_cores*8, P) f32.
    return jnp.sum(partials)


def _weighted_mean(loss_elems, loss_term_weights, *, block_rows=None):
    """loss_term_weights * mean(loss_elems) with the sum done in Pallas."""
    total = loss_elems.size
    assert total > 0

    if loss_elems.ndim >= 2 and loss_elems.shape[-1] % 128 == 0:
        # Lane-aligned: collapse leading dims for free, stream as-is (no copy).
        x2 = loss_elems.reshape(-1, loss_elems.shape[-1])
    else:
        # Ragged shape: flatten + pad the tail to a lane-dense 2D slab.  The
        # padded zeros contribute nothing to the sum; divisor uses true count.
        flat = loss_elems.reshape(-1)
        pad = (-flat.size) % _FALLBACK_LANES
        if pad:
            flat = jnp.pad(flat, (0, pad))
        x2 = flat.reshape(-1, _FALLBACK_LANES)

    total_sum = _pallas_sum_2d(x2, block_rows=block_rows)
    scale = jnp.float32(loss_term_weights) / jnp.float32(total)
    return total_sum * scale


class BasicLoss:
    """JAX/Pallas port of the PyTorch BasicLoss base class."""

    def __init__(self, loss_term_weights=1.0):
        self.loss_term_weights = loss_term_weights
        self.pair_based_loss = True
        self.info = {}  # Odict() in the original

    def forward(self, logits, labels):
        # TODO(synk): the PyTorch BasicLoss.forward raises NotImplementedError;
        # the concrete per-pair loss formula lives only in subclasses.  Here we
        # run the base-class-owned semantics (loss_term_weights weighting +
        # scalar mean reduction) over the per-element loss tensor, using
        # `logits` (in its native dtype) as the per-element loss placeholder.
        # `labels` are accepted for API parity but intentionally not streamed
        # through the kernel.
        loss = _weighted_mean(logits, self.loss_term_weights)
        self.info["scalar/loss"] = loss
        return loss, self.info


if __name__ == "__main__":
    key = jax.random.PRNGKey(0)
    k1, k2, k3, k4, k5 = jax.random.split(key, 5)

    # --- Case 1: small lane-aligned f32 input through the module API --------
    N, P = 16, 128
    logits = jax.random.normal(k1, (N, P), dtype=jnp.float32)
    labels = jax.random.randint(k2, (N,), 0, 8, dtype=jnp.int32)

    module = BasicLoss(loss_term_weights=0.5)
    loss, info = module.forward(logits, labels)
    loss = jax.block_until_ready(loss)
    ref = 0.5 * jnp.mean(logits)
    assert jnp.allclose(loss, ref, atol=1e-5, rtol=1e-5), (loss, ref)

    # --- Case 2: native bf16 input, N not a multiple of the tile ------------
    N2, P2 = 300, 256
    x_bf16 = jax.random.normal(k3, (N2, P2), dtype=jnp.float32).astype(jnp.bfloat16)
    loss2 = jax.block_until_ready(_weighted_mean(x_bf16, 0.5))
    ref2 = 0.5 * jnp.mean(x_bf16.astype(jnp.float32))
    assert jnp.allclose(loss2, ref2, atol=1e-2, rtol=1e-2), (loss2, ref2)

    # --- Case 3: force small blocks to exercise the 2-core split + masking --
    N3, P3 = 40, 128
    x3 = jax.random.normal(k4, (N3, P3), dtype=jnp.float32)
    loss3 = jax.block_until_ready(_weighted_mean(x3, 2.0, block_rows=16))
    ref3 = 2.0 * jnp.mean(x3)
    assert jnp.allclose(loss3, ref3, atol=1e-5, rtol=1e-5), (loss3, ref3)

    # --- Case 4: 4D ragged shape (last dim not lane-aligned) via module API -
    x4 = jax.random.normal(k5, (2, 4, 16, 16), dtype=jnp.float32)
    lbl4 = jax.random.randint(k2, (2,), 0, 4, dtype=jnp.int32)
    module4 = BasicLoss(loss_term_weights=1.5)
    loss4, _ = module4.forward(x4, lbl4)
    loss4 = jax.block_until_ready(loss4)
    ref4 = 1.5 * jnp.mean(x4)
    assert jnp.allclose(loss4, ref4, atol=1e-5, rtol=1e-5), (loss4, ref4)

    print("KERNEL_OK")
</pallas_src>

<mosaic_0001>
module attributes {stable_mosaic.version = 11 : i64} {
  func.func @_partial_sum_kernel(%arg0: i32, %arg1: i32, %arg2: memref<16x128xf32, #tpu.memory_space<vmem>>, %arg3: memref<8x128xf32, #tpu.memory_space<vmem>>) attributes {dimension_semantics = [#tpu.dimension_semantics<parallel>, #tpu.dimension_semantics<arbitrary>], iteration_bounds = array<i64: 1, 1>, scalar_prefetch = 0 : i64, scratch_operands = 0 : i64, tpu.core_type = #tpu.core_type<tc>, window_params = [{transform_indices = @transform_0, window_bounds = array<i64: 16, 128>}, {transform_indices = @transform_1, window_bounds = array<i64: 8, 128>}]} {
    %c0_i32 = arith.constant 0 : i32
    %0 = arith.cmpi eq, %arg1, %c0_i32 : i32
    %1 = arith.extui %0 : i1 to i32
    %c0_i32_0 = arith.constant 0 : i32
    %2 = arith.cmpi ne, %1, %c0_i32_0 : i32
    scf.if %2 {
      %cst_6 = arith.constant 0.000000e+00 : f32
      %9 = vector.broadcast %cst_6 : f32 to vector<8x128xf32>
      %c0_7 = arith.constant 0 : index
      %c0_8 = arith.constant 0 : index
      %10 = vector.load %arg3[%c0_7, %c0_8] : memref<8x128xf32, #tpu.memory_space<vmem>>, vector<8x128xf32>
      tpu.vector_store %arg3[%c0_7, %c0_8], %9 {strides = array<i32>} : memref<8x128xf32, #tpu.memory_space<vmem>>, vector<8x128xf32>,
    } else {
    }
    %c0 = arith.constant 0 : index
    %c0_1 = arith.constant 0 : index
    %3 = vector.load %arg2[%c0, %c0_1] : memref<16x128xf32, #tpu.memory_space<vmem>>, vector<16x128xf32>
    %c0_2 = arith.constant 0 : index
    %c0_3 = arith.constant 0 : index
    %4 = vector.load %arg3[%c0_2, %c0_3] : memref<8x128xf32, #tpu.memory_space<vmem>>, vector<8x128xf32>
    %5 = vector.shape_cast %3 : vector<16x128xf32> to vector<2x8x128xf32>
    %cst = arith.constant dense<0.000000e+00> : vector<8x128xf32>
    %6 = vector.multi_reduction <add>, %5, %cst [0] : vector<2x8x128xf32> to vector<8x128xf32>
    %7 = arith.addf %4, %6 : vector<8x128xf32>
    %c0_4 = arith.constant 0 : index
    %c0_5 = arith.constant 0 : index
    %8 = vector.load %arg3[%c0_4, %c0_5] : memref<8x128xf32, #tpu.memory_space<vmem>>, vector<8x128xf32>
    tpu.vector_store %arg3[%c0_4, %c0_5], %7 {strides = array<i32>} : memref<8x128xf32, #tpu.memory_space<vmem>>, vector<8x128xf32>,
    return
  }
  func.func @transform_0(%arg0: i32, %arg1: i32) -> (i32, i32) {
    %c1_i32 = arith.constant 1 : i32
    %0 = arith.muli %arg0, %c1_i32 : i32
    %1 = arith.addi %0, %arg1 : i32
    %c0_i32 = arith.constant 0 : i32
    %2 = arith.minsi %1, %c0_i32 : i32
    %c0_i32_0 = arith.constant 0 : i32
    %c0_i32_1 = arith.constant 0 : i32
    return %2, %c0_i32_0 : i32, i32
  }
  func.func @transform_1(%arg0: i32, %arg1: i32) -> (i32, i32) {
    %c0_i32 = arith.constant 0 : i32
    %c0_i32_0 = arith.constant 0 : i32
    return %arg0, %c0_i32 : i32, i32
  }
}

</mosaic_0001>

<bundles_post_ra>
// kernel: tpu_custom_call.1
= control target key start
LH: loop header
LB: loop body
LE: loop exit
PB: predicated region body
PF: predicated region fallthrough
CT: control target
= control target key end

     0   :  { %6 = vsyncpa [#allocation3], 0  ;;  %s152_s0 = inlined_call_operand.hbm [shape: f32[16,128], index: 0, kind: input, shape index: {}]   ;;  %s153_s1 = inlined_call_operand.hbm [shape: f32[8,128], index: 1, kind: output, shape index: {}]  }
   0x1   :  { %7 = vsyncpa [#allocation4], 0  ;;  %s114_s6 = smov [#allocation2]   ;;  %s66_s10 = scalar_lea.hbm %s152_s0, 256 }
   0x2   :  { %s19_s7 = sshll.u32 %s114_s6, 4  ;;  %p67_p0 = scmp.ne.s32.totalorder %s152_s0, %s66_s10  ;;  %s20_s7 = int_to_ptr.vmem [resolvable:$true] %s19_s7 }
   0x3   :  { %p70_p1 = scmp.lt.u32.totalorder %s66_s10, %s152_s0 }
   0x5   :  { %p72_p2 = pnand %p70_p1, %p67_p0 }
   0x7   :  { %75 = shalt.err (!%p72_p2)
}
   0x8   :  { %s76_s15 = scalar_lea.vmem %s20_s7, 256  ;;  %p81_p4 = scmp.lt.s32.totalorder %s20_s7, %s20_s7 }
   0x9   :  { %p77_p3 = scmp.ne.s32.totalorder %s20_s7, %s76_s15  ;;  %p82_p5 = scmp.lt.s32.totalorder %s76_s15, %s76_s15 }
   0xb   :  { %p83_p6 = por %p82_p5, %p81_p4 }
   0xd   :  { %p84_p7 = pnand %p83_p6, %p77_p3 }
   0xf   :  { %87 = shalt.err (!%p84_p7)
}
  0x10   :  { %s115_s16 = smov 128   ;;  %s116_s17 = smov 8  }
  0x11   :  { %25 = dma.hbm_to_vmem [thread:$0]  %s152_s0, 256, %s20_s7, [#allocation3], %s115_s16, %s115_s16, %s116_s17  }
  0x12   :  { %110 = dma.done.wait [#allocation3], 256  }
  0x13   :  { %111 = vsyncadd [#allocation3], 4294967040  ;;  %v38_v0 = vld [vmem:[#allocation2] sm:$0xff]  ;;  %v39_v1 = vld [vmem:[#allocation2 + $0x8] sm:$0xff]  ;;  %s117_s20 = smov [#allocation5]  }
  0x14   :  { %s50_s21 = sshll.u32 %s117_s20, 4  ;;  %v41_v2 = vadd.f32 %v39_v1, %v38_v0  ;;  %s51_s21 = int_to_ptr.vmem [resolvable:$true] %s50_s21 }
  0x15   :  { %s88_s22 = scalar_lea.vmem %s51_s21, 128  ;;  %p93_p9 = scmp.lt.s32.totalorder %s51_s21, %s51_s21 }
  0x16   :  { %43 = vst [vmem:[#allocation5] sm:$0xff] %v41_v2  ;;  %p89_p8 = scmp.ne.s32.totalorder %s51_s21, %s88_s22  ;;  %p94_p10 = scmp.lt.s32.totalorder %s88_s22, %s88_s22 }
  0x18   :  { %p95_p11 = por %p94_p10, %p93_p9 }
  0x1a   :  { %p96_p12 = pnand %p95_p11, %p89_p8 }
  0x1c   :  { %99 = shalt.err (!%p96_p12)
}
  0x1d   :  { %s100_s0 = scalar_lea.hbm %s153_s1, 128 }
  0x1e   :  { %p101_p13 = scmp.ne.s32.totalorder %s153_s1, %s100_s0  ;;  %p104_p0 = scmp.lt.u32.totalorder %s100_s0, %s153_s1 }
  0x20   :  { %p106_p1 = pnand %p104_p0, %p101_p13 }
  0x22   :  { %109 = shalt.err (!%p106_p1)
}
  0x23   :  { %53 = dma.vmem_to_hbm [thread:$0]  %s51_s21, 128, %s153_s1, [#allocation4]  }
  0x24   :  { %112 = dma.done.wait [#allocation4], 128  }
  0x25   :  { %113 = vsyncadd [#allocation4], 4294967168 }
  0x26   :  { %57 = vsyncpa [#allocation3], 1 }
  0x27   :  { %58 = vsyncpa [#allocation4], 1 }

</bundles_post_ra>
